<compile_context>
chip_gen: v7x
topology: tpu7x:2x2x1
jax: 0.10.0
libtpu: 0.0.40
codegen_flags: <defaults>
</compile_context>

<pallas_src>
import functools

import jax
import jax.numpy as jnp
from jax import lax
from jax.experimental import pallas as pl
from jax.experimental.pallas import tpu as pltpu

_LANE = 512            # lane-dense last dim (multiple of 128)
_MAX_TILE_ROWS = 1024  # (1024, 512) f32 tile = 2 MiB per buffer


def _round_up(v, m):
    return ((v + m - 1) // m) * m


def _wrap_i32(v):
    """Fold an unsigned 32-bit constant into int32 range (two's complement)."""
    v &= 0xFFFFFFFF
    return v - (1 << 32) if v >= (1 << 31) else v


_GOLDEN = _wrap_i32(0x9E3779B9)
_MIX1 = _wrap_i32(0x7FEB352D)
_MIX2 = _wrap_i32(0x846CA68B)


def _shr_logical(x, n):
    # Logical (unsigned) right shift on int32 values.
    return lax.shift_right_logical(x, jnp.full_like(x, n))


def _hash32(idx, salt):
    """lowbias32-style integer mixer; int32 arithmetic with wraparound."""
    x = idx * _GOLDEN + salt
    x = jnp.bitwise_xor(x, _shr_logical(x, 16))
    x = x * _MIX1
    x = jnp.bitwise_xor(x, _shr_logical(x, 15))
    x = x * _MIX2
    x = jnp.bitwise_xor(x, _shr_logical(x, 16))
    return x


# Acklam's rational approximation of the inverse normal CDF (|rel err| < 1.2e-9).
_A = (-3.969683028665376e+01, 2.209460984245205e+02, -2.759285104469687e+02,
      1.383577518672690e+02, -3.066479806614716e+01, 2.506628277459239e+00)
_B = (-5.447609879822406e+01, 1.615858368580409e+02, -1.556989798598866e+02,
      6.680131188771972e+01, -1.328068155288572e+01)
_C = (-7.784894002430293e-03, -3.223964580411365e-01, -2.400758277161838e+00,
      -2.549732539343734e+00, 4.374664141464968e+00, 2.938163982698783e+00)
_D = (7.784695709041462e-03, 3.224671290700398e-01, 2.445134137142996e+00,
      3.754408661907416e+00)
_P_LOW = 0.02425


def _probit(p):
    """Inverse normal CDF: maps uniform p in (0,1) to N(0,1). Branchless."""
    # Central region.
    q = p - 0.5
    r = q * q
    num_c = ((((_A[0] * r + _A[1]) * r + _A[2]) * r + _A[3]) * r + _A[4]) * r + _A[5]
    den_c = ((((_B[0] * r + _B[1]) * r + _B[2]) * r + _B[3]) * r + _B[4]) * r + 1.0
    x_central = q * num_c / den_c
    # Tails (computed everywhere with safe arguments, then selected).
    pt = jnp.minimum(p, 1.0 - p)                 # in (0, 0.5]
    qt = jnp.sqrt(-2.0 * jnp.log(pt))
    num_t = ((((_C[0] * qt + _C[1]) * qt + _C[2]) * qt + _C[3]) * qt + _C[4]) * qt + _C[5]
    den_t = (((_D[0] * qt + _D[1]) * qt + _D[2]) * qt + _D[3]) * qt + 1.0
    x_tail = num_t / den_t                       # negative (lower-tail) magnitude
    x_tail = jnp.where(p > 0.5, -x_tail, x_tail)
    return jnp.where(pt < _P_LOW, x_tail, x_central)


def _noise_kernel(seed_ref, x_ref, o_ref, *, sigma, tile_r, lane):
    pid = pl.program_id(0)
    seed = seed_ref[0]

    row = lax.broadcasted_iota(jnp.int32, (tile_r, lane), 0)
    col = lax.broadcasted_iota(jnp.int32, (tile_r, lane), 1)
    # Global element index -> per-element, tiling-invariant noise stream.
    idx = (pid * tile_r + row) * lane + col

    bits = _hash32(idx, seed)
    bits24 = jnp.bitwise_and(bits, 0x00FFFFFF)                    # 24 uniform bits
    p = (bits24.astype(jnp.float32) + 0.5) * (1.0 / 16777216.0)   # uniform in (0,1)
    z = _probit(p)                                                # ~ N(0, 1)

    o_ref[...] = (x_ref[...].astype(jnp.float32) + sigma * z).astype(o_ref.dtype)


def noise_forward(x, *, use_noise=True, sigma=0.2, seed=0):
    """JAX/Pallas equivalent of Noise(use_noise, sigma).forward(x).

    x: (N, C, H, W) float32 array (NCHW, same as the PyTorch module).
    """
    if not use_noise:
        return x

    orig_shape = x.shape
    orig_dtype = x.dtype
    total = x.size

    # Lane-dense 2-D slab (rows, _LANE); pad so rows tile evenly.
    rows = pl.cdiv(total, _LANE)
    tile_r = min(_MAX_TILE_ROWS, _round_up(rows, 8))
    rows_p = _round_up(rows, tile_r)
    padded = rows_p * _LANE

    flat = x.reshape(-1)
    if padded != total:
        flat = jnp.pad(flat, (0, padded - total))
    x2d = flat.reshape(rows_p, _LANE)

    grid = (rows_p // tile_r,)
    seed_arr = jnp.asarray([seed], dtype=jnp.int32)
    kernel = functools.partial(
        _noise_kernel, sigma=float(sigma), tile_r=tile_r, lane=_LANE
    )

    out2d = pl.pallas_call(
        kernel,
        out_shape=jax.ShapeDtypeStruct(x2d.shape, x2d.dtype),
        grid=grid,
        in_specs=[
            pl.BlockSpec(memory_space=pltpu.SMEM),              # seed scalar
            pl.BlockSpec((tile_r, _LANE), lambda i: (i, 0)),    # pipelined input tile
        ],
        out_specs=pl.BlockSpec((tile_r, _LANE), lambda i: (i, 0)),
        compiler_params=pltpu.CompilerParams(
            dimension_semantics=("parallel",),                  # v7x: shard across TCs
            vmem_limit_bytes=32 * 1024 * 1024,
        ),
    )(seed_arr, x2d)

    return out2d.reshape(-1)[:total].reshape(orig_shape).astype(orig_dtype)


if __name__ == "__main__":
    key = jax.random.PRNGKey(0)
    x = jax.random.normal(key, (2, 4, 16, 16), dtype=jnp.float32)  # NCHW

    # use_noise=True path (the interesting one)
    y = jax.block_until_ready(noise_forward(x, use_noise=True, sigma=0.2, seed=1234))
    assert y.shape == x.shape and y.dtype == x.dtype

    # Sanity: residual noise has roughly the right scale and is centered.
    resid = y - x
    resid_std = float(jnp.std(resid))
    resid_mean = float(jnp.mean(resid))
    assert 0.12 < resid_std < 0.28, f"unexpected noise std {resid_std}"
    assert abs(resid_mean) < 0.05, f"unexpected noise mean {resid_mean}"

    # use_noise=False path: identity
    y_id = jax.block_until_ready(noise_forward(x, use_noise=False))
    assert bool(jnp.all(y_id == x))

    print("KERNEL_OK")
</pallas_src>

<mosaic_0001>
module attributes {stable_mosaic.version = 11 : i64} {
  func.func @_noise_kernel(%arg0: i32, %arg1: memref<1xi32, #tpu.memory_space<smem>>, %arg2: memref<8x512xf32, #tpu.memory_space<vmem>>, %arg3: memref<8x512xf32, #tpu.memory_space<vmem>>) attributes {dimension_semantics = [#tpu.dimension_semantics<parallel>], iteration_bounds = array<i64: 1>, scalar_prefetch = 0 : i64, scratch_operands = 0 : i64, tpu.core_type = #tpu.core_type<tc>, window_params = [{transform_indices = @transform_0, window_bounds = array<i64: 1>}, {transform_indices = @transform_1, window_bounds = array<i64: 8, 512>}, {transform_indices = @transform_2, window_bounds = array<i64: 8, 512>}]} {
    %c0 = arith.constant 0 : index
    %0 = memref.load %arg1[%c0] : memref<1xi32, #tpu.memory_space<smem>>
    %1 = tpu.iota {dimensions = array<i32: 0>} : vector<8x512xi32>
    %2 = tpu.iota {dimensions = array<i32: 1>} : vector<8x512xi32>
    %c8_i32 = arith.constant 8 : i32
    %3 = arith.muli %arg0, %c8_i32 : i32
    %4 = vector.broadcast %3 : i32 to vector<8x512xi32>
    %5 = arith.addi %4, %1 : vector<8x512xi32>
    %c512_i32 = arith.constant 512 : i32
    %6 = vector.broadcast %c512_i32 : i32 to vector<8x512xi32>
    %7 = arith.muli %5, %6 : vector<8x512xi32>
    %8 = arith.addi %7, %2 : vector<8x512xi32>
    %c-1640531527_i32 = arith.constant -1640531527 : i32
    %9 = vector.broadcast %c-1640531527_i32 : i32 to vector<8x512xi32>
    %10 = arith.muli %8, %9 : vector<8x512xi32>
    %11 = vector.broadcast %0 : i32 to vector<8x512xi32>
    %12 = arith.addi %10, %11 : vector<8x512xi32>
    %c16_i32 = arith.constant 16 : i32
    %13 = vector.broadcast %c16_i32 : i32 to vector<8x512xi32>
    %14 = arith.shrui %12, %13 : vector<8x512xi32>
    %15 = arith.xori %12, %14 : vector<8x512xi32>
    %c2146121005_i32 = arith.constant 2146121005 : i32
    %16 = vector.broadcast %c2146121005_i32 : i32 to vector<8x512xi32>
    %17 = arith.muli %15, %16 : vector<8x512xi32>
    %c15_i32 = arith.constant 15 : i32
    %18 = vector.broadcast %c15_i32 : i32 to vector<8x512xi32>
    %19 = arith.shrui %17, %18 : vector<8x512xi32>
    %20 = arith.xori %17, %19 : vector<8x512xi32>
    %c-2073254261_i32 = arith.constant -2073254261 : i32
    %21 = vector.broadcast %c-2073254261_i32 : i32 to vector<8x512xi32>
    %22 = arith.muli %20, %21 : vector<8x512xi32>
    %c16_i32_0 = arith.constant 16 : i32
    %23 = vector.broadcast %c16_i32_0 : i32 to vector<8x512xi32>
    %24 = arith.shrui %22, %23 : vector<8x512xi32>
    %25 = arith.xori %22, %24 : vector<8x512xi32>
    %c16777215_i32 = arith.constant 16777215 : i32
    %26 = vector.broadcast %c16777215_i32 : i32 to vector<8x512xi32>
    %27 = arith.andi %25, %26 : vector<8x512xi32>
    %28 = arith.sitofp %27 : vector<8x512xi32> to vector<8x512xf32>
    %cst = arith.constant 5.000000e-01 : f32
    %29 = vector.broadcast %cst : f32 to vector<8x512xf32>
    %30 = arith.addf %28, %29 : vector<8x512xf32>
    %cst_1 = arith.constant 5.96046448E-8 : f32
    %31 = vector.broadcast %cst_1 : f32 to vector<8x512xf32>
    %32 = arith.mulf %30, %31 : vector<8x512xf32>
    %cst_2 = arith.constant 5.000000e-01 : f32
    %33 = vector.broadcast %cst_2 : f32 to vector<8x512xf32>
    %34 = arith.subf %32, %33 : vector<8x512xf32>
    %35 = arith.mulf %34, %34 : vector<8x512xf32>
    %cst_3 = arith.constant -39.6968307 : f32
    %36 = vector.broadcast %cst_3 : f32 to vector<8x512xf32>
    %37 = arith.mulf %36, %35 : vector<8x512xf32>
    %cst_4 = arith.constant 220.946106 : f32
    %38 = vector.broadcast %cst_4 : f32 to vector<8x512xf32>
    %39 = arith.addf %37, %38 : vector<8x512xf32>
    %40 = arith.mulf %39, %35 : vector<8x512xf32>
    %cst_5 = arith.constant -275.928497 : f32
    %41 = vector.broadcast %cst_5 : f32 to vector<8x512xf32>
    %42 = arith.addf %40, %41 : vector<8x512xf32>
    %43 = arith.mulf %42, %35 : vector<8x512xf32>
    %cst_6 = arith.constant 138.357758 : f32
    %44 = vector.broadcast %cst_6 : f32 to vector<8x512xf32>
    %45 = arith.addf %43, %44 : vector<8x512xf32>
    %46 = arith.mulf %45, %35 : vector<8x512xf32>
    %cst_7 = arith.constant -30.6647987 : f32
    %47 = vector.broadcast %cst_7 : f32 to vector<8x512xf32>
    %48 = arith.addf %46, %47 : vector<8x512xf32>
    %49 = arith.mulf %48, %35 : vector<8x512xf32>
    %cst_8 = arith.constant 2.50662827 : f32
    %50 = vector.broadcast %cst_8 : f32 to vector<8x512xf32>
    %51 = arith.addf %49, %50 : vector<8x512xf32>
    %cst_9 = arith.constant -54.4760971 : f32
    %52 = vector.broadcast %cst_9 : f32 to vector<8x512xf32>
    %53 = arith.mulf %52, %35 : vector<8x512xf32>
    %cst_10 = arith.constant 161.585831 : f32
    %54 = vector.broadcast %cst_10 : f32 to vector<8x512xf32>
    %55 = arith.addf %53, %54 : vector<8x512xf32>
    %56 = arith.mulf %55, %35 : vector<8x512xf32>
    %cst_11 = arith.constant -155.698975 : f32
    %57 = vector.broadcast %cst_11 : f32 to vector<8x512xf32>
    %58 = arith.addf %56, %57 : vector<8x512xf32>
    %59 = arith.mulf %58, %35 : vector<8x512xf32>
    %cst_12 = arith.constant 66.8013153 : f32
    %60 = vector.broadcast %cst_12 : f32 to vector<8x512xf32>
    %61 = arith.addf %59, %60 : vector<8x512xf32>
    %62 = arith.mulf %61, %35 : vector<8x512xf32>
    %cst_13 = arith.constant -13.2806816 : f32
    %63 = vector.broadcast %cst_13 : f32 to vector<8x512xf32>
    %64 = arith.addf %62, %63 : vector<8x512xf32>
    %65 = arith.mulf %64, %35 : vector<8x512xf32>
    %cst_14 = arith.constant 1.000000e+00 : f32
    %66 = vector.broadcast %cst_14 : f32 to vector<8x512xf32>
    %67 = arith.addf %65, %66 : vector<8x512xf32>
    %68 = arith.mulf %34, %51 : vector<8x512xf32>
    %69 = arith.divf %68, %67 : vector<8x512xf32>
    %cst_15 = arith.constant 1.000000e+00 : f32
    %70 = vector.broadcast %cst_15 : f32 to vector<8x512xf32>
    %71 = arith.subf %70, %32 : vector<8x512xf32>
    %72 = arith.minimumf %32, %71 : vector<8x512xf32>
    %73 = math.log %72 : vector<8x512xf32>
    %cst_16 = arith.constant -2.000000e+00 : f32
    %74 = vector.broadcast %cst_16 : f32 to vector<8x512xf32>
    %75 = arith.mulf %74, %73 : vector<8x512xf32>
    %76 = math.sqrt %75 : vector<8x512xf32>
    %cst_17 = arith.constant -0.0077848942 : f32
    %77 = vector.broadcast %cst_17 : f32 to vector<8x512xf32>
    %78 = arith.mulf %77, %76 : vector<8x512xf32>
    %cst_18 = arith.constant -0.322396457 : f32
    %79 = vector.broadcast %cst_18 : f32 to vector<8x512xf32>
    %80 = arith.addf %78, %79 : vector<8x512xf32>
    %81 = arith.mulf %80, %76 : vector<8x512xf32>
    %cst_19 = arith.constant -2.40075827 : f32
    %82 = vector.broadcast %cst_19 : f32 to vector<8x512xf32>
    %83 = arith.addf %81, %82 : vector<8x512xf32>
    %84 = arith.mulf %83, %76 : vector<8x512xf32>
    %cst_20 = arith.constant -2.54973245 : f32
    %85 = vector.broadcast %cst_20 : f32 to vector<8x512xf32>
    %86 = arith.addf %84, %85 : vector<8x512xf32>
    %87 = arith.mulf %86, %76 : vector<8x512xf32>
    %cst_21 = arith.constant 4.37466431 : f32
    %88 = vector.broadcast %cst_21 : f32 to vector<8x512xf32>
    %89 = arith.addf %87, %88 : vector<8x512xf32>
    %90 = arith.mulf %89, %76 : vector<8x512xf32>
    %cst_22 = arith.constant 2.938164 : f32
    %91 = vector.broadcast %cst_22 : f32 to vector<8x512xf32>
    %92 = arith.addf %90, %91 : vector<8x512xf32>
    %cst_23 = arith.constant 0.00778469583 : f32
    %93 = vector.broadcast %cst_23 : f32 to vector<8x512xf32>
    %94 = arith.mulf %93, %76 : vector<8x512xf32>
    %cst_24 = arith.constant 0.322467119 : f32
    %95 = vector.broadcast %cst_24 : f32 to vector<8x512xf32>
    %96 = arith.addf %94, %95 : vector<8x512xf32>
    %97 = arith.mulf %96, %76 : vector<8x512xf32>
    %cst_25 = arith.constant 2.44513416 : f32
    %98 = vector.broadcast %cst_25 : f32 to vector<8x512xf32>
    %99 = arith.addf %97, %98 : vector<8x512xf32>
    %100 = arith.mulf %99, %76 : vector<8x512xf32>
    %cst_26 = arith.constant 3.7544086 : f32
    %101 = vector.broadcast %cst_26 : f32 to vector<8x512xf32>
    %102 = arith.addf %100, %101 : vector<8x512xf32>
    %103 = arith.mulf %102, %76 : vector<8x512xf32>
    %cst_27 = arith.constant 1.000000e+00 : f32
    %104 = vector.broadcast %cst_27 : f32 to vector<8x512xf32>
    %105 = arith.addf %103, %104 : vector<8x512xf32>
    %106 = arith.divf %92, %105 : vector<8x512xf32>
    %cst_28 = arith.constant 5.000000e-01 : f32
    %107 = vector.broadcast %cst_28 : f32 to vector<8x512xf32>
    %108 = arith.cmpf ogt, %32, %107 : vector<8x512xf32>
    %cst_29 = arith.constant 0.000000e+00 : f32
    %109 = vector.broadcast %cst_29 : f32 to vector<8x512xf32>
    %110 = arith.subf %109, %106 : vector<8x512xf32>
    %111 = arith.select %108, %110, %106 : vector<8x512xi1>, vector<8x512xf32>
    %cst_30 = arith.constant 2.425000e-02 : f32
    %112 = vector.broadcast %cst_30 : f32 to vector<8x512xf32>
    %113 = arith.cmpf olt, %72, %112 : vector<8x512xf32>
    %114 = arith.select %113, %111, %69 : vector<8x512xi1>, vector<8x512xf32>
    %c0_31 = arith.constant 0 : index
    %c0_32 = arith.constant 0 : index
    %115 = vector.load %arg2[%c0_31, %c0_32] : memref<8x512xf32, #tpu.memory_space<vmem>>, vector<8x512xf32>
    %cst_33 = arith.constant 2.000000e-01 : f32
    %116 = vector.broadcast %cst_33 : f32 to vector<8x512xf32>
    %117 = arith.mulf %116, %114 : vector<8x512xf32>
    %118 = arith.addf %115, %117 : vector<8x512xf32>
    %c0_34 = arith.constant 0 : index
    %c0_35 = arith.constant 0 : index
    %119 = vector.load %arg3[%c0_34, %c0_35] : memref<8x512xf32, #tpu.memory_space<vmem>>, vector<8x512xf32>
    tpu.vector_store %arg3[%c0_34, %c0_35], %118 {strides = array<i32>} : memref<8x512xf32, #tpu.memory_space<vmem>>, vector<8x512xf32>,
    return
  }
  func.func @transform_0(%arg0: i32) -> i32 {
    %c0_i32 = arith.constant 0 : i32
    %c0_i32_0 = arith.constant 0 : i32
    return %c0_i32 : i32
  }
  func.func @transform_1(%arg0: i32) -> (i32, i32) {
    %c0_i32 = arith.constant 0 : i32
    %c0_i32_0 = arith.constant 0 : i32
    return %arg0, %c0_i32 : i32, i32
  }
  func.func @transform_2(%arg0: i32) -> (i32, i32) {
    %c0_i32 = arith.constant 0 : i32
    %c0_i32_0 = arith.constant 0 : i32
    return %arg0, %c0_i32 : i32, i32
  }
}

</mosaic_0001>

<bundles_post_ra>
// kernel: tpu_custom_call.1
= control target key start
LH: loop header
LB: loop body
LE: loop exit
PB: predicated region body
PF: predicated region fallthrough
CT: control target
= control target key end

     0   :  { %8 = vsyncpa [#allocation4], 0  ;;  %s677_s0 = inlined_call_operand.<no memory space> [shape: s32[1], index: 0, kind: input, shape index: {}]   ;;  %s678_s1 = inlined_call_operand.hbm [shape: f32[8,512], index: 1, kind: input, shape index: {}]   ;;  %s679_s2 = inlined_call_operand.hbm [shape: f32[8,512], index: 2, kind: output, shape index: {}]  }
   0x1   :  { %9 = vsyncpa [#allocation5], 0  ;;  %s463_s9 = smov [#allocation3]   ;;  %s415_s13 = scalar_lea.hbm %s678_s1, 512 }
   0x2   :  { %s18_s10 = sshll.u32 %s463_s9, 4  ;;  %p416_p0 = scmp.ne.s32.totalorder %s678_s1, %s415_s13  ;;  %s19_s10 = int_to_ptr.vmem [resolvable:$true] %s18_s10 }
   0x3   :  { %p419_p1 = scmp.lt.u32.totalorder %s415_s13, %s678_s1 }
   0x5   :  { %p421_p2 = pnand %p419_p1, %p416_p0 }
   0x7   :  { %424 = shalt.err (!%p421_p2)
}
   0x8   :  { %s425_s18 = scalar_lea.vmem %s19_s10, 512  ;;  %p430_p4 = scmp.lt.s32.totalorder %s19_s10, %s19_s10 }
   0x9   :  { %p426_p3 = scmp.ne.s32.totalorder %s19_s10, %s425_s18  ;;  %p431_p5 = scmp.lt.s32.totalorder %s425_s18, %s425_s18 }
   0xb   :  { %p432_p6 = por %p431_p5, %p430_p4 }
   0xd   :  { %p433_p7 = pnand %p432_p6, %p426_p3 }
   0xf   :  { %436 = shalt.err (!%p433_p7)
}
  0x10   :  { %21 = dma.hbm_to_vmem [thread:$0]  %s678_s1, 512, %s19_s10, [#allocation4]  }
  0x11   :  { %459 = dma.done.wait [#allocation4], 512  }
  0x12   :  { %460 = vsyncadd [#allocation4], 4294966784  ;;  %v26_v0 = vlaneseq  ;;  %v45_v11 = vstv %s677_s0  ;;  %s464_s0 = smov [#allocation6]  }
  0x13   :  { %s368_s1 = sshll.u32 %s464_s0, 4  ;;  %s369_s1 = int_to_ptr.vmem [resolvable:$true] %s368_s1 }
  0x14   :  { %v27_v1 = vshrl.u32 %v26_v0, 7  ;;  %v29_v2 = vand.u32 127, %v26_v0  ;;  %s437_s23 = scalar_lea.vmem %s369_s1, 512  ;;  %p442_p9 = scmp.lt.s32.totalorder %s369_s1, %s369_s1 }
  0x15   :  { %p438_p8 = scmp.ne.s32.totalorder %s369_s1, %s437_s23  ;;  %p443_p10 = scmp.lt.s32.totalorder %s437_s23, %s437_s23 }
  0x16   :  { %v36_v3 = vmul.u32 512, %v27_v1  ;;  %v30_v4 = vadd.s32 128, %v29_v2  ;;  %v31_v5 = vadd.s32 256, %v29_v2  ;;  %v32_v6 = vadd.s32 384, %v29_v2 }
  0x17   :  { %p444_p11 = por %p443_p10, %p442_p9 }
  0x18   :  { %v37_v7 = vadd.s32 %v36_v3, %v29_v2  ;;  %v38_v8 = vadd.s32 %v36_v3, %v30_v4  ;;  %v39_v9 = vadd.s32 %v36_v3, %v31_v5  ;;  %v40_v10 = vadd.s32 %v36_v3, %v32_v6 }
  0x19   :  { %p445_p12 = pnand %p444_p11, %p438_p8 }
  0x1a   :  { %v41_v12 = vmul.u32 2654435769, %v37_v7  ;;  %v42_v13 = vmul.u32 2654435769, %v38_v8 }
  0x1b   :  { %v43_v14 = vmul.u32 2654435769, %v39_v9  ;;  %v44_v15 = vmul.u32 2654435769, %v40_v10 }
  0x1c   :  { %v46_v16 = vadd.s32 %v45_v11, %v41_v12  ;;  %v47_v17 = vadd.s32 %v45_v11, %v42_v13 }
  0x1d   :  { %v48_v18 = vadd.s32 %v45_v11, %v43_v14  ;;  %v49_v19 = vadd.s32 %v45_v11, %v44_v15 }
  0x1e   :  { %v50_v20 = vshrl.u32 %v46_v16, 16  ;;  %v51_v21 = vshrl.u32 %v47_v17, 16 }
  0x1f   :  { %v52_v22 = vshrl.u32 %v48_v18, 16  ;;  %v53_v23 = vshrl.u32 %v49_v19, 16 }
  0x20   :  { %v54_v24 = vxor.u32 %v50_v20, %v46_v16  ;;  %v55_v25 = vxor.u32 %v51_v21, %v47_v17 }
  0x21   :  { %v56_v26 = vxor.u32 %v52_v22, %v48_v18  ;;  %v57_v27 = vxor.u32 %v53_v23, %v49_v19 }
  0x22   :  { %v58_v28 = vmul.u32 2146121005, %v54_v24  ;;  %v59_v29 = vmul.u32 2146121005, %v55_v25 }
  0x23   :  { %v60_v30 = vmul.u32 2146121005, %v56_v26  ;;  %v61_v31 = vmul.u32 2146121005, %v57_v27 }
  0x24   :  { %v62_v32 = vshrl.u32 %v58_v28, 15  ;;  %v63_v33 = vshrl.u32 %v59_v29, 15 }
  0x25   :  { %v64_v34 = vshrl.u32 %v60_v30, 15  ;;  %v65_v35 = vshrl.u32 %v61_v31, 15 }
  0x26   :  { %v66_v36 = vxor.u32 %v62_v32, %v58_v28  ;;  %v67_v37 = vxor.u32 %v63_v33, %v59_v29 }
  0x27   :  { %v68_v38 = vxor.u32 %v64_v34, %v60_v30  ;;  %v69_v41 = vxor.u32 %v65_v35, %v61_v31 }
  0x28   :  { %v70_v39 = vmul.u32 2221713035, %v66_v36  ;;  %v71_v40 = vmul.u32 2221713035, %v67_v37 }
  0x29   :  { %v72_v42 = vmul.u32 2221713035, %v68_v38  ;;  %v73_v48 = vmul.u32 2221713035, %v69_v41 }
  0x2a   :  { %v74_v43 = vshrl.u32 %v70_v39, 16  ;;  %v75_v44 = vshrl.u32 %v71_v40, 16 }
  0x2b   :  { %v76_v45 = vshrl.u32 %v72_v42, 16  ;;  %v77_v55 = vshrl.u32 %v73_v48, 16 }
  0x2c   :  { %v78_v46 = vxor.u32 %v74_v43, %v70_v39  ;;  %v79_v47 = vxor.u32 %v75_v44, %v71_v40 }
  0x2d   :  { %v80_v49 = vxor.u32 %v76_v45, %v72_v42  ;;  %v81_v62 = vxor.u32 %v77_v55, %v73_v48 }
  0x2e   :  { %v82_v50 = vand.u32 16777215, %v78_v46  ;;  %v83_v51 = vand.u32 16777215, %v79_v47 }
  0x2f   :  { %v84_v52 = vand.u32 16777215, %v80_v49  ;;  %v85_v7 = vand.u32 16777215, %v81_v62 }
  0x30   :  { %v86_v53 = vcvt.s32.f32 %v82_v50  ;;  %v87_v54 = vcvt.s32.f32 %v83_v51 }
  0x31   :  { %v88_v56 = vcvt.s32.f32 %v84_v52  ;;  %v89_v14 = vcvt.s32.f32 %v85_v7 }
  0x32   :  { %v90_v57 = vadd.f32 0.5, %v86_v53  ;;  %v91_v58 = vadd.f32 0.5, %v87_v54 }
  0x33   :  { %v92_v59 = vadd.f32 0.5, %v88_v56  ;;  %v93_v19 = vadd.f32 0.5, %v89_v14 }
  0x34   :  { %v495_v60 = vmul.f32 5.9604645e-08, %v90_v57  ;;  %v497_v61 = vmul.f32 5.9604645e-08, %v91_v58 }
  0x35   :  { %v499_v63 = vmul.f32 5.9604645e-08, %v92_v59  ;;  %v545_v27 = vmul.f32 5.9604645e-08, %v93_v19 }
  0x36   :  { %v502_v0 = vadd.f32 -0.5, %v495_v60  ;;  %v198_v1 = vsub.f32 1.0, %v495_v60  ;;  %v506_v2 = vadd.f32 -0.5, %v497_v61  ;;  %v199_v3 = vsub.f32 1.0, %v497_v61 }
  0x37   :  { %v200_v6 = vsub.f32 1.0, %v499_v63  ;;  %v529_v12 = vadd.f32 -0.5, %v499_v63  ;;  %v549_v34 = vadd.f32 -0.5, %v545_v27  ;;  %v201_v58 = vsub.f32 1.0, %v545_v27 }
  0x38   :  { %v511_v4 = vmul.f32 %v502_v0, %v502_v0  ;;  %v514_v5 = vmin.f32 %v495_v60, %v198_v1  ;;  %v519_v8 = vmul.f32 %v506_v2, %v506_v2  ;;  %v522_v9 = vmin.f32 %v497_v61, %v199_v3 }
  0x39   :  { %v532_v13 = vmin.f32 %v499_v63, %v200_v6  ;;  %v537_v18 = vmul.f32 %v529_v12, %v529_v12  ;;  %v555_v44 = vmul.f32 %v549_v34, %v549_v34  ;;  %v573_v14 = vmin.f32 %v545_v27, %v201_v58 }
  0x3a   :  { %v146_v10 = vmul.f32 -54.476097, %v511_v4  ;;  %383 = vlog2.f32 %v514_v5  ;;  %v106_v11 = vmul.f32 -39.69683, %v511_v4  ;;  %v147_v16 = vmul.f32 -54.476097, %v519_v8 }
  0x3b   :  { %385 = vlog2.f32 %v522_v9  ;;  %v107_v22 = vmul.f32 -39.69683, %v519_v8  ;;  %v108_v23 = vmul.f32 -39.69683, %v537_v18  ;;  %v148_v26 = vmul.f32 -54.476097, %v537_v18 }
  0x3c   :  { %v150_v15 = vadd.f32 161.58583, %v146_v10  ;;  %v110_v17 = vadd.f32 220.9461, %v106_v11  ;;  %387 = vlog2.f32 %v532_v13  ;;  %v151_v21 = vadd.f32 161.58583, %v147_v16 }
  0x3d   :  { %v111_v32 = vadd.f32 220.9461, %v107_v22  ;;  %v112_v36 = vadd.f32 220.9461, %v108_v23  ;;  %v152_v39 = vadd.f32 161.58583, %v148_v26 }
  0x3e   :  { %v154_v20 = vmul.f32 %v150_v15, %v511_v4  ;;  %v114_v25 = vmul.f32 %v110_v17, %v511_v4  ;;  %v155_v31 = vmul.f32 %v151_v21, %v519_v8  ;;  %v109_v52 = vmul.f32 -39.69683, %v555_v44 }
  0x3f   :  { %v115_v43 = vmul.f32 %v111_v32, %v519_v8  ;;  %v116_v45 = vmul.f32 %v112_v36, %v537_v18  ;;  %v156_v47 = vmul.f32 %v152_v39, %v537_v18  ;;  %v149_v53 = vmul.f32 -54.476097, %v555_v44 }
  0x40   :  { %v158_v29 = vadd.f32 -155.69897, %v154_v20  ;;  %v118_v37 = vadd.f32 -275.9285, %v114_v25  ;;  %v159_v41 = vadd.f32 -155.69897, %v155_v31 }
  0x41   :  { %v119_v51 = vadd.f32 -275.9285, %v115_v43  ;;  %v120_v54 = vadd.f32 -275.9285, %v116_v45  ;;  %v160_v57 = vadd.f32 -155.69897, %v156_v47 }
  0x42   :  { %v162_v40 = vmul.f32 %v158_v29, %v511_v4  ;;  %v122_v46 = vmul.f32 %v118_v37, %v511_v4  ;;  %v163_v49 = vmul.f32 %v159_v41, %v519_v8  ;;  %v569_v3 = vadd.f32 220.9461, %v109_v52 }
  0x43   :  { %v123_v1 = vmul.f32 %v119_v51, %v519_v8  ;;  %v153_v6 = vadd.f32 161.58583, %v149_v53  ;;  %v124_v11 = vmul.f32 %v120_v54, %v537_v18  ;;  %v164_v17 = vmul.f32 %v160_v57, %v537_v18 }
  0x44   :  { %v384_v24 = vpop.eup %383  ;;  %v166_v48 = vadd.f32 66.801315, %v162_v40  ;;  %v126_v56 = vadd.f32 138.35776, %v122_v46  ;;  %v167_v62 = vadd.f32 66.801315, %v163_v49 }
  0x45   :  { %v386_v28 = vpop.eup %385  ;;  %v207_v30 = vmul.f32 0.6931472, %v384_v24  ;;  %v127_v24 = vadd.f32 138.35776, %v123_v1  ;;  %v157_v29 = vmul.f32 %v153_v6, %v555_v44  ;;  %vm326_vm8 = vcmp.gt.f32.partialorder %v495_v60, 0.5 }
  0x46   :  { %v209_v33 = vmul.f32 0.6931472, %v386_v28  ;;  %v388_v42 = vpop.eup %387  ;;  %v170_v59 = vmul.f32 %v166_v48, %v511_v4  ;;  %v130_v15 = vmul.f32 %v126_v56, %v511_v4  ;;  %v171_v21 = vmul.f32 %v167_v62, %v519_v8 }
  0x47   :  { %v214_v35 = vmul.f32 -2.0, %v207_v30  ;;  %v211_v50 = vmul.f32 0.6931472, %v388_v42  ;;  %v128_v28 = vadd.f32 138.35776, %v124_v11  ;;  %v131_v42 = vmul.f32 %v127_v24, %v519_v8 }
  0x48   :  { %v215_v38 = vmul.f32 -2.0, %v209_v33  ;;  %v174_v20 = vadd.f32 -13.280682, %v170_v59  ;;  %v168_v33 = vadd.f32 66.801315, %v164_v17  ;;  %vm327_vm10 = vcmp.gt.f32.partialorder %v497_v61, 0.5 }
  0x49   :  { %389 = vrsqrt.f32 %v214_v35  ;;  %v563_v55 = vmul.f32 -2.0, %v211_v50  ;;  %vm220_vm0 = vcmp.eq.f32.partialorder %v214_v35, inf  ;;  %v223_v10 = vand.u32 2147483648, %v214_v35 }
  0x4a   :  { %391 = vrsqrt.f32 %v215_v38  ;;  %vm222_vm1 = vcmp.eq.f32.partialorder %v214_v35, 0.0  ;;  %vm227_vm2 = vcmp.eq.f32.partialorder %v215_v38, inf  ;;  %v230_v22 = vand.u32 2147483648, %v215_v38 }
  0x4b   :  { %393 = vrsqrt.f32 %v563_v55  ;;  %vm229_vm3 = vcmp.eq.f32.partialorder %v215_v38, 0.0  ;;  %v134_v36 = vadd.f32 -30.664799, %v130_v15  ;;  %v178_v37 = vmul.f32 %v174_v20, %v511_v4 }
  0x4c   :  { %395 = vlog2.f32 %v573_v14  ;;  %vm234_vm4 = vcmp.eq.f32.partialorder %v563_v55, inf  ;;  %vm236_vm5 = vcmp.eq.f32.partialorder %v563_v55, 0.0  ;;  %v132_v54 = vmul.f32 %v128_v28, %v537_v18 }
  0x4d   :  { %v138_v51 = vmul.f32 %v134_v36, %v511_v4  ;;  %v182_v52 = vadd.f32 1.0, %v178_v37  ;;  %v135_v62 = vadd.f32 -30.664799, %v131_v42  ;;  %v172_v6 = vmul.f32 %v168_v33, %v537_v18 }
  0x4e   :  { %vm338_vm9 = vcmp.lt.f32.partialorder %v514_v5, 0.02425  ;;  %vm339_vm11 = vcmp.lt.f32.partialorder %v522_v9, 0.02425  ;;  %v347_v5 = vld [vmem:[#allocation3 + $0x8] sm:$0xff]  ;;  %vm328_vm12 = vcmp.gt.f32.partialorder %v499_v63, 0.5 }
  0x4f   :  { %397 = vrcp.f32 %v182_v52  ;;  %v117_v52 = vmul.f32 %v569_v3, %v555_v44  ;;  %vm340_vm13 = vcmp.lt.f32.partialorder %v532_v13, 0.02425  ;;  %vm329_vm14 = vcmp.gt.f32.partialorder %v545_v27, 0.5 }
  0x50   :  { %vm341_vm15 = vcmp.lt.f32.partialorder %v573_v14, 0.02425 }
  0x53   :  { %v390_v7 = vpop.eup %389 }
  0x54   :  { %v219_v16 = vmul.f32 %v390_v7, %v214_v35  ;;  %v392_v19 = vpop.eup %391 }
  0x55   :  { %v226_v25 = vmul.f32 %v392_v19, %v215_v38  ;;  %v394_v45 = vpop.eup %393 }
  0x56   :  { %v221_v23 = vsel %vm220_vm0, %v214_v35, %v219_v16  ;;  %v175_v35 = vadd.f32 -13.280682, %v171_v21  ;;  %v233_v50 = vmul.f32 %v394_v45, %v563_v55  ;;  %v396_v16 = vpop.eup %395  ;;  %v161_v45 = vadd.f32 -155.69897, %v157_v29 }
  0x57   :  { %v578_v26 = vsel %vm222_vm1, %v223_v10, %v221_v23  ;;  %v228_v32 = vsel %vm227_vm2, %v215_v38, %v226_v25  ;;  %v237_v38 = vand.u32 2147483648, %v563_v55  ;;  %v213_v23 = vmul.f32 0.6931472, %v396_v16 }
  0x58   :  { %v246_v30 = vmul.f32 -0.007784894, %v578_v26  ;;  %v286_v31 = vmul.f32 0.007784696, %v578_v26  ;;  %v585_v39 = vsel %vm229_vm3, %v230_v22, %v228_v32  ;;  %v235_v59 = vsel %vm234_vm4, %v563_v55, %v233_v50 }
  0x59   :  { %v247_v43 = vmul.f32 -0.007784894, %v585_v39  ;;  %v287_v46 = vmul.f32 0.007784696, %v585_v39  ;;  %v604_v7 = vsel %vm236_vm5, %v237_v38, %v235_v59  ;;  %v179_v11 = vmul.f32 %v175_v35, %v519_v8 }
  0x5a   :  { %v250_v40 = vadd.f32 -0.32239646, %v246_v30  ;;  %v290_v41 = vadd.f32 0.32246712, %v286_v31  ;;  %v248_v19 = vmul.f32 -0.007784894, %v604_v7 }
  0x5b   :  { %v251_v49 = vadd.f32 -0.32239646, %v247_v43  ;;  %v291_v53 = vadd.f32 0.32246712, %v287_v46  ;;  %v288_v20 = vmul.f32 0.007784696, %v604_v7 }
  0x5c   :  { %v254_v47 = vmul.f32 %v250_v40, %v578_v26  ;;  %v294_v48 = vmul.f32 %v290_v41, %v578_v26  ;;  %v176_v25 = vadd.f32 -13.280682, %v172_v6  ;;  %v252_v28 = vadd.f32 -0.32239646, %v248_v19  ;;  %v398_v6 = vpop.eup %397 }
  0x5d   :  { %v255_v58 = vmul.f32 %v251_v49, %v585_v39  ;;  %v295_v1 = vmul.f32 %v291_v53, %v585_v39  ;;  %v292_v30 = vadd.f32 0.32246712, %v288_v20  ;;  %v615_v36 = vmul.f32 -2.0, %v213_v23 }
  0x5e   :  { %v258_v56 = vadd.f32 -2.4007583, %v254_v47  ;;  %v298_v57 = vadd.f32 2.4451342, %v294_v48  ;;  %v183_v37 = vadd.f32 1.0, %v179_v11  ;;  %v256_v40 = vmul.f32 %v252_v28, %v604_v7 }
  0x5f   :  { %v259_v15 = vadd.f32 -2.4007583, %v255_v58  ;;  %v299_v17 = vadd.f32 2.4451342, %v295_v1  ;;  %v296_v41 = vmul.f32 %v292_v30, %v604_v7  ;;  %399 = vrsqrt.f32 %v615_v36 }
  0x60   :  { %v262_v4 = vmul.f32 %v258_v56, %v578_v26  ;;  %v302_v10 = vmul.f32 %v298_v57, %v578_v26  ;;  %v260_v47 = vadd.f32 -2.4007583, %v256_v40  ;;  %v142_v49 = vadd.f32 2.5066283, %v138_v51 }
  0x61   :  { %v263_v55 = vmul.f32 %v259_v15, %v585_v39  ;;  %v303_v24 = vmul.f32 %v299_v17, %v585_v39  ;;  %v300_v48 = vadd.f32 2.4451342, %v296_v41  ;;  %v180_v50 = vmul.f32 %v176_v25, %v537_v18 }
  0x62   :  { %v266_v21 = vadd.f32 -2.5497324, %v262_v4  ;;  %v306_v22 = vadd.f32 3.7544086, %v302_v10  ;;  %v139_v53 = vmul.f32 %v135_v62, %v519_v8  ;;  %v264_v57 = vmul.f32 %v260_v47, %v604_v7 }
  0x63   :  { %v267_v33 = vadd.f32 -2.5497324, %v263_v55  ;;  %v307_v35 = vadd.f32 3.7544086, %v303_v24  ;;  %v304_v29 = vmul.f32 %v300_v48, %v604_v7  ;;  %v136_v59 = vadd.f32 -30.664799, %v132_v54 }
  0x64   :  { %v270_v31 = vmul.f32 %v266_v21, %v578_v26  ;;  %v310_v32 = vmul.f32 %v306_v22, %v578_v26  ;;  %v165_v1 = vmul.f32 %v161_v45, %v555_v44  ;;  %v268_v4 = vadd.f32 -2.5497324, %v264_v57  ;;  %v346_v48 = vld [vmem:[#allocation3] sm:$0xff] }
  0x65   :  { %v271_v43 = vmul.f32 %v267_v33, %v585_v39  ;;  %v311_v38 = vmul.f32 %v307_v35, %v585_v39  ;;  %v308_v10 = vadd.f32 3.7544086, %v304_v29  ;;  %v184_v11 = vadd.f32 1.0, %v180_v50 }
  0x66   :  { %v314_v42 = vadd.f32 1.0, %v310_v32  ;;  %v274_v46 = vadd.f32 4.3746643, %v270_v31  ;;  %v272_v3 = vmul.f32 %v268_v4, %v604_v7  ;;  %v186_v62 = vmul.f32 %v502_v0, %v142_v49 }
  0x67   :  { %v315_v56 = vadd.f32 1.0, %v311_v38  ;;  %v275_v58 = vadd.f32 4.3746643, %v271_v43  ;;  %v312_v8 = vmul.f32 %v308_v10, %v604_v7  ;;  %v143_v15 = vadd.f32 2.5066283, %v139_v53 }
  0x68   :  { %401 = vrcp.f32 %v314_v42  ;;  %v278_v51 = vmul.f32 %v274_v46, %v578_v26  ;;  %v121_v17 = vadd.f32 -275.9285, %v117_v52  ;;  %v140_v19 = vmul.f32 %v136_v59, %v537_v18 }
  0x69   :  { %403 = vrcp.f32 %v183_v37  ;;  %v279_v16 = vmul.f32 %v275_v58, %v585_v39  ;;  %v316_v20 = vadd.f32 1.0, %v312_v8  ;;  %v169_v21 = vadd.f32 66.801315, %v165_v1  ;;  %v400_v26 = vpop.eup %399 }
  0x6a   :  { %405 = vrcp.f32 %v315_v56  ;;  %v282_v54 = vadd.f32 2.938164, %v278_v51  ;;  %v276_v22 = vadd.f32 4.3746643, %v272_v3  ;;  %vm241_vm6 = vcmp.eq.f32.partialorder %v615_v36, inf }
  0x6b   :  { %407 = vrcp.f32 %v184_v11  ;;  %v244_v55 = vand.u32 2147483648, %v615_v36  ;;  %v240_v23 = vmul.f32 %v400_v26, %v615_v36  ;;  %vm243_vm7 = vcmp.eq.f32.partialorder %v615_v36, 0.0 }
  0x6c   :  { %409 = vrcp.f32 %v316_v20  ;;  %v283_v18 = vadd.f32 2.938164, %v279_v16  ;;  %v125_v39 = vmul.f32 %v121_v17, %v555_v44  ;;  %v187_v25 = vmul.f32 %v506_v2, %v143_v15 }
  0x6d   :  { %v144_v28 = vadd.f32 2.5066283, %v140_v19  ;;  %v242_v30 = vsel %vm241_vm6, %v615_v36, %v240_v23  ;;  %v191_v32 = vmul.f32 %v398_v6, %v186_v62  ;;  %v280_v33 = vmul.f32 %v276_v22, %v604_v7 }
  0x6e   :  { %v173_v37 = vmul.f32 %v169_v21, %v555_v44  ;;  %v245_v35 = vsel %vm243_vm7, %v244_v55, %v242_v30  ;;  %v129_v2 = vadd.f32 138.35776, %v125_v39  ;;  %v348_v21 = vld [vmem:[#allocation3 + $0x10] sm:$0xff] }
  0x6f   :  { %v249_v42 = vmul.f32 -0.007784894, %v245_v35  ;;  %v289_v43 = vmul.f32 0.007784696, %v245_v35  ;;  %v284_v50 = vadd.f32 2.938164, %v280_v33  ;;  %v188_v56 = vmul.f32 %v529_v12, %v144_v28 }
  0x70   :  { %v177_v52 = vadd.f32 -13.280682, %v173_v37  ;;  %v133_v8 = vmul.f32 %v129_v2, %v555_v44 }
  0x71   :  { %v253_v38 = vadd.f32 -0.32239646, %v249_v42  ;;  %v293_v47 = vadd.f32 0.32246712, %v289_v43  ;;  %v349_v42 = vld [vmem:[#allocation3 + $0x18] sm:$0xff] }
  0x72   :  { %v402_v0 = vpop.eup %401  ;;  %v181_v12 = vmul.f32 %v177_v52, %v555_v44  ;;  %v137_v63 = vadd.f32 -30.664799, %v133_v8 }
  0x73   :  { %v319_v24 = vmul.f32 %v402_v0, %v282_v54  ;;  %v404_v31 = vpop.eup %403  ;;  %v257_v57 = vmul.f32 %v253_v38, %v245_v35  ;;  %v297_v29 = vmul.f32 %v293_v47, %v245_v35 }
  0x74   :  { %v406_v40 = vpop.eup %405  ;;  %v193_v46 = vmul.f32 %v404_v31, %v187_v25  ;;  %v185_v19 = vadd.f32 1.0, %v181_v12  ;;  %v141_v39 = vmul.f32 %v137_v63, %v555_v44 }
  0x75   :  { %v330_v41 = vsub.f32 0.0, %v319_v24  ;;  %v321_v45 = vmul.f32 %v406_v40, %v283_v18  ;;  %v408_v58 = vpop.eup %407  ;;  %v261_v51 = vadd.f32 -2.4007583, %v257_v57  ;;  %v301_v4 = vadd.f32 2.4451342, %v297_v29 }
  0x76   :  { %v410_v59 = vpop.eup %409  ;;  %v195_v3 = vmul.f32 %v408_v58, %v188_v56  ;;  %411 = vrcp.f32 %v185_v19 }
  0x77   :  { %v334_v36 = vsel %vm326_vm8, %v330_v41, %v319_v24  ;;  %v331_v49 = vsub.f32 0.0, %v321_v45  ;;  %v323_v11 = vmul.f32 %v410_v59, %v284_v50  ;;  %v265_v61 = vmul.f32 %v261_v51, %v245_v35 }
  0x78   :  { %v342_v7 = vsel %vm338_vm9, %v334_v36, %v191_v32  ;;  %v305_v62 = vmul.f32 %v301_v4, %v245_v35  ;;  %v145_v24 = vadd.f32 2.5066283, %v141_v39 }
  0x79   :  { %v350_v53 = vmul.f32 0.2, %v342_v7  ;;  %v335_v60 = vsel %vm327_vm10, %v331_v49, %v321_v45  ;;  %v332_v16 = vsub.f32 0.0, %v323_v11  ;;  %v269_v9 = vadd.f32 -2.5497324, %v265_v61 }
  0x7a   :  { %v343_v6 = vsel %vm339_vm11, %v335_v60, %v193_v46  ;;  %v309_v17 = vadd.f32 3.7544086, %v305_v62  ;;  %v189_v28 = vmul.f32 %v549_v34, %v145_v24 }
  0x7b   :  { %v354_v1 = vadd.f32 %v350_v53, %v346_v48  ;;  %v351_v10 = vmul.f32 0.2, %v343_v6  ;;  %v336_v54 = vsel %vm328_vm12, %v332_v16, %v323_v11  ;;  %v273_v26 = vmul.f32 %v269_v9, %v245_v35 }
  0x7c   :  { %v344_v20 = vsel %vm340_vm13, %v336_v54, %v195_v3  ;;  %v313_v22 = vmul.f32 %v309_v17, %v245_v35 }
  0x7d   :  { %358 = vst [vmem:[#allocation6] sm:$0xff] %v354_v1  ;;  %v355_v15 = vadd.f32 %v351_v10, %v347_v5  ;;  %v352_v55 = vmul.f32 0.2, %v344_v20  ;;  %v277_v18 = vadd.f32 4.3746643, %v273_v26 }
  0x7e   :  { %v317_v23 = vadd.f32 1.0, %v313_v22 }
  0x7f   :  { %359 = vst [vmem:[#allocation6 + $0x8] sm:$0xff] %v355_v15  ;;  %v356_v0 = vadd.f32 %v352_v55, %v348_v21  ;;  %v281_v13 = vmul.f32 %v277_v18, %v245_v35 }
  0x80   :  { %413 = vrcp.f32 %v317_v23  ;;  %v412_v30 = vpop.eup %411 }
  0x81   :  { %360 = vst [vmem:[#allocation6 + $0x10] sm:$0xff] %v356_v0  ;;  %v285_v25 = vadd.f32 2.938164, %v281_v13  ;;  %v197_v33 = vmul.f32 %v412_v30, %v189_v28 }
  0x8a   :  { %v414_v31 = vpop.eup %413 }
  0x8b   :  { %v325_v32 = vmul.f32 %v414_v31, %v285_v25 }
  0x8d   :  { %v333_v37 = vsub.f32 0.0, %v325_v32 }
  0x8f   :  { %v337_v40 = vsel %vm329_vm14, %v333_v37, %v325_v32 }
  0x90   :  { %v345_v41 = vsel %vm341_vm15, %v337_v40, %v197_v33 }
  0x91   :  { %v353_v44 = vmul.f32 0.2, %v345_v41 }
  0x93   :  { %v357_v35 = vadd.f32 %v353_v44, %v349_v42 }
  0x95   :  { %361 = vst [vmem:[#allocation6 + $0x18] sm:$0xff] %v357_v35 }
  0x96   :  { %448 = shalt.err (!%p445_p12)
}
  0x97   :  { %s449_s26 = scalar_lea.hbm %s679_s2, 512 }
  0x98   :  { %p450_p13 = scmp.ne.s32.totalorder %s679_s2, %s449_s26  ;;  %p453_p0 = scmp.lt.u32.totalorder %s449_s26, %s679_s2 }
  0x9a   :  { %p455_p1 = pnand %p453_p0, %p450_p13 }
  0x9c   :  { %458 = shalt.err (!%p455_p1)
}
  0x9d   :  { %371 = dma.vmem_to_hbm [thread:$0]  %s369_s1, 512, %s679_s2, [#allocation5]  }
  0x9e   :  { %461 = dma.done.wait [#allocation5], 512  }
  0x9f   :  { %462 = vsyncadd [#allocation5], 4294966784 }
  0xa0   :  { %375 = vsyncpa [#allocation4], 1 }
  0xa1   :  { %376 = vsyncpa [#allocation5], 1 }

</bundles_post_ra>
